<compile_context>
chip_gen: v7x
topology: tpu7x:2x2x1
jax: 0.10.0
libtpu: 0.0.40
codegen_flags: <defaults>
</compile_context>

<pallas_src>
import jax
import jax.numpy as jnp
from jax.experimental import pallas as pl
from jax.experimental.pallas import tpu as pltpu

_LANE_CANDIDATES = (4096, 2048, 1024, 512, 256, 128)


def _make_kernel(elem_add, elem_multiply):
    """Elementwise kernel; Python-int scalars baked in as constants.

    t_ref is either a (tile_rows, lanes) block (full-size mytensor stream) or
    a (1, lanes) block (scalar mytensor); jnp broadcasting covers both.
    """
    def kernel(x_ref, t_ref, p2_ref, p3_ref, p4_ref):
        x = x_ref[...]
        t = t_ref[...]
        p2 = x + t
        p3 = p2 + jnp.asarray(elem_add, dtype=x.dtype)
        p4 = p3 * jnp.asarray(elem_multiply, dtype=x.dtype)
        p2_ref[...] = p2
        p3_ref[...] = p3
        p4_ref[...] = p4
    return kernel


def _divisors(n):
    divs = []
    i = 1
    while i * i <= n:
        if n % i == 0:
            divs.append(i)
            if i != n // i:
                divs.append(n // i)
        i += 1
    return divs


def _vmem_budget():
    """Per-generation (block_budget_bytes, vmem_limit_bytes).

    5 streamed arrays x 2 pipeline buffers x block must fit comfortably in
    VMEM: 128 MiB on v5e/v6e, 64 MiB per TensorCore on v7x.
    """
    try:
        info = pltpu.get_tpu_info()
        cap = int(getattr(info, "vmem_capacity_bytes", 64 << 20))
    except Exception:
        cap = 64 << 20                      # conservative default (v7x per-core)
    usable = min(cap // 2, 48 << 20)        # budget for the 5x2 pipeline buffers
    block_budget = max(min(usable // 10, 4 << 20), 512 << 10)
    vmem_limit = min(usable + (16 << 20), (cap * 3) // 4)
    return block_budget, vmem_limit


def _choose_slab(total, itemsize):
    """Pick (rows, lanes, padded_total) for a lane-dense 2D slab."""
    pack = max(1, 32 // itemsize)           # sublane packing: 8 f32, 16 bf16, 32 i8
    for lanes in _LANE_CANDIDATES:
        if total % lanes == 0 and (total // lanes) % pack == 0:
            return total // lanes, lanes, total
    # Awkward total: pad to a multiple of pack*128 so stores stay unmasked
    # and lane-dense; the padding is sliced off the outputs in the wrapper.
    unit = pack * 128
    padded_total = ((total + unit - 1) // unit) * unit
    for lanes in _LANE_CANDIDATES:
        if padded_total % lanes == 0 and (padded_total // lanes) % pack == 0:
            return padded_total // lanes, lanes, padded_total
    return padded_total // 128, 128, padded_total  # unreachable, but safe


def _pick_tile_rows(rows, lanes, itemsize, pack, block_budget_bytes):
    """Largest sublane-aligned divisor of rows fitting the VMEM budget,
    preferring an even grid of >= 4 blocks (megacore split on v7x)."""
    if rows <= pack:
        return rows                          # single full-extent block (tiny array)
    row_bytes = lanes * itemsize
    divs = [d for d in _divisors(rows) if d % pack == 0]
    if not divs:
        return rows
    fitting = [d for d in divs if d * row_bytes <= block_budget_bytes]
    if not fitting:
        fitting = [min(divs)]
    best = max(fitting)
    # Don't shrink blocks below ~512 KiB just to get more grid steps.
    min_tr = max(pack, (512 * 1024) // row_bytes)
    for want_grid in (4, 2):
        cands = [d for d in fitting
                 if (rows // d) >= want_grid and (rows // d) % 2 == 0 and d >= min_tr]
        if cands:
            best = max(cands)
            break
    return best


def exercize_forward(x, mytensor, elem_add, elem_multiply):
    """Pallas equivalent of ExercizeModel.forward. Returns (p2, p3, p4)."""
    dtype = x.dtype
    itemsize = jnp.dtype(dtype).itemsize
    orig_shape = x.shape
    total = int(x.size)
    pack = max(1, 32 // itemsize)

    block_budget, vmem_limit = _vmem_budget()
    rows, lanes, padded_total = _choose_slab(total, itemsize)
    tr = _pick_tile_rows(rows, lanes, itemsize, pack, block_budget)
    grid = (rows // tr,)

    def to_slab(a):
        flat = a.reshape(-1)
        if padded_total != total:
            flat = jnp.pad(flat, (0, padded_total - total))
        return flat.reshape(rows, lanes)

    x2 = to_slab(x)

    slab_spec = pl.BlockSpec((tr, lanes), lambda i: (i, 0))
    t_arr = jnp.asarray(mytensor, dtype=dtype)
    if t_arr.size == 1:
        # Scalar mytensor: stream one (1, lanes) row and broadcast in-kernel,
        # instead of materializing a full-size broadcast in HBM.
        t2 = jnp.broadcast_to(t_arr.reshape(1, 1), (1, lanes))
        t_spec = pl.BlockSpec((1, lanes), lambda i: (0, 0))
        t_bytes = lanes * itemsize
    else:
        # TODO(synk): partial broadcasts (e.g. per-channel mytensor) still
        # materialize the full broadcast; only scalar and full-shape mytensor
        # are streamed at their true size.
        if t_arr.shape != orig_shape:
            t_arr = jnp.broadcast_to(t_arr, orig_shape)
        t2 = to_slab(t_arr)
        t_spec = slab_spec
        t_bytes = padded_total * itemsize

    kernel = _make_kernel(elem_add, elem_multiply)
    out_sds = jax.ShapeDtypeStruct((rows, lanes), dtype)

    cost = pl.CostEstimate(
        flops=3 * padded_total,
        transcendentals=0,
        bytes_accessed=(padded_total * itemsize          # x read
                        + t_bytes                        # mytensor read
                        + 3 * padded_total * itemsize))  # p2, p3, p4 writes

    p2, p3, p4 = pl.pallas_call(
        kernel,
        out_shape=(out_sds, out_sds, out_sds),
        grid=grid,
        in_specs=[slab_spec, t_spec],
        out_specs=(slab_spec, slab_spec, slab_spec),
        compiler_params=pltpu.CompilerParams(
            dimension_semantics=("parallel",),
            vmem_limit_bytes=int(vmem_limit)),
        cost_estimate=cost,
    )(x2, t2)

    def from_slab(o):
        flat = o.reshape(-1)
        if padded_total != total:
            flat = flat[:total]
        return flat.reshape(orig_shape)

    return from_slab(p2), from_slab(p3), from_slab(p4)


if __name__ == "__main__":
    # Deterministic synthetic inputs (no checkpoint / no files).
    key = jax.random.PRNGKey(0)
    kx, kt = jax.random.split(key)

    elem_add = 3
    elem_multiply = 2

    # Case 1: mytensor with the same shape as x (small NCHW example).
    shape = (2, 4, 16, 16)
    x = jax.random.normal(kx, shape, dtype=jnp.float32)
    mytensor = jax.random.normal(kt, shape, dtype=jnp.float32)
    p2, p3, p4 = exercize_forward(x, mytensor, elem_add, elem_multiply)
    jax.block_until_ready((p2, p3, p4))
    ref_p2 = x + mytensor
    ref_p3 = ref_p2 + elem_add
    ref_p4 = ref_p3 * elem_multiply
    assert jnp.allclose(p2, ref_p2, atol=1e-6)
    assert jnp.allclose(p3, ref_p3, atol=1e-6)
    assert jnp.allclose(p4, ref_p4, atol=1e-6)

    # Case 2: scalar mytensor (in-kernel broadcast, no full HBM broadcast).
    my_scalar = jnp.float32(0.5)
    q2, q3, q4 = exercize_forward(x, my_scalar, elem_add, elem_multiply)
    jax.block_until_ready((q2, q3, q4))
    assert jnp.allclose(q2, x + my_scalar, atol=1e-6)
    assert jnp.allclose(q3, x + my_scalar + elem_add, atol=1e-6)
    assert jnp.allclose(q4, (x + my_scalar + elem_add) * elem_multiply, atol=1e-6)

    # Case 3: awkward element count (exercises the pad-to-lane-dense path).
    shape3 = (3, 5, 7)
    x3 = jax.random.normal(kx, shape3, dtype=jnp.float32)
    t3 = jax.random.normal(kt, shape3, dtype=jnp.float32)
    r2, r3, r4 = exercize_forward(x3, t3, elem_add, elem_multiply)
    jax.block_until_ready((r2, r3, r4))
    assert jnp.allclose(r2, x3 + t3, atol=1e-6)
    assert jnp.allclose(r3, x3 + t3 + elem_add, atol=1e-6)
    assert jnp.allclose(r4, (x3 + t3 + elem_add) * elem_multiply, atol=1e-6)

    print("KERNEL_OK")
</pallas_src>

<mosaic_0001>
module attributes {stable_mosaic.version = 11 : i64} {
  func.func @kernel(%arg0: i32, %arg1: memref<8x256xf32, #tpu.memory_space<vmem>>, %arg2: memref<8x256xf32, #tpu.memory_space<vmem>>, %arg3: memref<8x256xf32, #tpu.memory_space<vmem>>, %arg4: memref<8x256xf32, #tpu.memory_space<vmem>>, %arg5: memref<8x256xf32, #tpu.memory_space<vmem>>) attributes {dimension_semantics = [#tpu.dimension_semantics<parallel>], iteration_bounds = array<i64: 1>, scalar_prefetch = 0 : i64, scratch_operands = 0 : i64, tpu.core_type = #tpu.core_type<tc>, window_params = [{transform_indices = @transform_0, window_bounds = array<i64: 8, 256>}, {transform_indices = @transform_1, window_bounds = array<i64: 8, 256>}, {transform_indices = @transform_2, window_bounds = array<i64: 8, 256>}, {transform_indices = @transform_3, window_bounds = array<i64: 8, 256>}, {transform_indices = @transform_4, window_bounds = array<i64: 8, 256>}]} {
    %c0 = arith.constant 0 : index
    %c0_0 = arith.constant 0 : index
    %0 = vector.load %arg1[%c0, %c0_0] : memref<8x256xf32, #tpu.memory_space<vmem>>, vector<8x256xf32>
    %c0_1 = arith.constant 0 : index
    %c0_2 = arith.constant 0 : index
    %1 = vector.load %arg2[%c0_1, %c0_2] : memref<8x256xf32, #tpu.memory_space<vmem>>, vector<8x256xf32>
    %2 = arith.addf %0, %1 : vector<8x256xf32>
    %cst = arith.constant 3.000000e+00 : f32
    %3 = vector.broadcast %cst : f32 to vector<8x256xf32>
    %4 = arith.addf %2, %3 : vector<8x256xf32>
    %cst_3 = arith.constant 2.000000e+00 : f32
    %5 = vector.broadcast %cst_3 : f32 to vector<8x256xf32>
    %6 = arith.mulf %4, %5 : vector<8x256xf32>
    %c0_4 = arith.constant 0 : index
    %c0_5 = arith.constant 0 : index
    %7 = vector.load %arg3[%c0_4, %c0_5] : memref<8x256xf32, #tpu.memory_space<vmem>>, vector<8x256xf32>
    tpu.vector_store %arg3[%c0_4, %c0_5], %2 {strides = array<i32>} : memref<8x256xf32, #tpu.memory_space<vmem>>, vector<8x256xf32>,
    %c0_6 = arith.constant 0 : index
    %c0_7 = arith.constant 0 : index
    %8 = vector.load %arg4[%c0_6, %c0_7] : memref<8x256xf32, #tpu.memory_space<vmem>>, vector<8x256xf32>
    tpu.vector_store %arg4[%c0_6, %c0_7], %4 {strides = array<i32>} : memref<8x256xf32, #tpu.memory_space<vmem>>, vector<8x256xf32>,
    %c0_8 = arith.constant 0 : index
    %c0_9 = arith.constant 0 : index
    %9 = vector.load %arg5[%c0_8, %c0_9] : memref<8x256xf32, #tpu.memory_space<vmem>>, vector<8x256xf32>
    tpu.vector_store %arg5[%c0_8, %c0_9], %6 {strides = array<i32>} : memref<8x256xf32, #tpu.memory_space<vmem>>, vector<8x256xf32>,
    return
  }
  func.func @transform_0(%arg0: i32) -> (i32, i32) {
    %c0_i32 = arith.constant 0 : i32
    %c0_i32_0 = arith.constant 0 : i32
    return %arg0, %c0_i32 : i32, i32
  }
  func.func @transform_1(%arg0: i32) -> (i32, i32) {
    %c0_i32 = arith.constant 0 : i32
    %c0_i32_0 = arith.constant 0 : i32
    return %arg0, %c0_i32 : i32, i32
  }
  func.func @transform_2(%arg0: i32) -> (i32, i32) {
    %c0_i32 = arith.constant 0 : i32
    %c0_i32_0 = arith.constant 0 : i32
    return %arg0, %c0_i32 : i32, i32
  }
  func.func @transform_3(%arg0: i32) -> (i32, i32) {
    %c0_i32 = arith.constant 0 : i32
    %c0_i32_0 = arith.constant 0 : i32
    return %arg0, %c0_i32 : i32, i32
  }
  func.func @transform_4(%arg0: i32) -> (i32, i32) {
    %c0_i32 = arith.constant 0 : i32
    %c0_i32_0 = arith.constant 0 : i32
    return %arg0, %c0_i32 : i32, i32
  }
}

</mosaic_0001>

<bundles_post_ra>
// kernel: tpu_custom_call.1
= control target key start
LH: loop header
LB: loop body
LE: loop exit
PB: predicated region body
PF: predicated region fallthrough
CT: control target
= control target key end

     0   :  { %10 = vsyncpa [#allocation3], 0  ;;  %s319_s0 = inlined_call_operand.hbm [shape: f32[8,256], index: 0, kind: input, shape index: {}]   ;;  %s320_s1 = inlined_call_operand.hbm [shape: f32[8,256], index: 1, kind: input, shape index: {}]   ;;  %s321_s2 = inlined_call_operand.hbm [shape: f32[8,256], index: 2, kind: output, shape index: {0}]   ;;  %s322_s3 = inlined_call_operand.hbm [shape: f32[8,256], index: 3, kind: output, shape index: {1}]   ;;  %s323_s4 = inlined_call_operand.hbm [shape: f32[8,256], index: 4, kind: output, shape index: {2}]  }
   0x1   :  { %11 = vsyncpa [#allocation6], 0 }
   0x2   :  { %12 = vsyncpa [#allocation4], 0 }
   0x3   :  { %13 = vsyncpa [#allocation9], 0  ;;  %s222_s15 = smov [#allocation2]   ;;  %s223_s17 = smov [#allocation5]  }
   0x4   :  { %s20_s16 = sshll.u32 %s222_s15, 4  ;;  %s30_s18 = sshll.u32 %s223_s17, 4  ;;  %s21_s16 = int_to_ptr.vmem [resolvable:$true] %s20_s16  ;;  %s31_s18 = int_to_ptr.vmem [resolvable:$true] %s30_s18 }
   0x5   :  { %s104_s21 = scalar_lea.hbm %s319_s0, 256 }
   0x6   :  { %p105_p0 = scmp.ne.s32.totalorder %s319_s0, %s104_s21  ;;  %p108_p1 = scmp.lt.u32.totalorder %s104_s21, %s319_s0 }
   0x8   :  { %p110_p2 = pnand %p108_p1, %p105_p0 }
   0xa   :  { %113 = shalt.err (!%p110_p2)
}
   0xb   :  { %s114_s26 = scalar_lea.vmem %s21_s16, 256  ;;  %p119_p4 = scmp.lt.s32.totalorder %s21_s16, %s21_s16 }
   0xc   :  { %p115_p3 = scmp.ne.s32.totalorder %s21_s16, %s114_s26  ;;  %p120_p5 = scmp.lt.s32.totalorder %s114_s26, %s114_s26 }
   0xe   :  { %p121_p6 = por %p120_p5, %p119_p4 }
  0x10   :  { %p122_p7 = pnand %p121_p6, %p115_p3 }
  0x12   :  { %125 = shalt.err (!%p122_p7)
}
  0x13   :  { %23 = dma.hbm_to_vmem [thread:$0]  %s319_s0, 256, %s21_s16, [#allocation3]  }
  0x14   :  { %s126_s5 = scalar_lea.hbm %s320_s1, 256 }
  0x15   :  { %p127_p8 = scmp.ne.s32.totalorder %s320_s1, %s126_s5  ;;  %p130_p9 = scmp.lt.u32.totalorder %s126_s5, %s320_s1 }
  0x17   :  { %p132_p10 = pnand %p130_p9, %p127_p8 }
  0x19   :  { %135 = shalt.err (!%p132_p10)
}
  0x1a   :  { %s136_s10 = scalar_lea.vmem %s31_s18, 256  ;;  %p141_p12 = scmp.lt.s32.totalorder %s31_s18, %s31_s18 }
  0x1b   :  { %p137_p11 = scmp.ne.s32.totalorder %s31_s18, %s136_s10  ;;  %p142_p13 = scmp.lt.s32.totalorder %s136_s10, %s136_s10 }
  0x1d   :  { %p143_p0 = por %p142_p13, %p141_p12 }
  0x1f   :  { %p144_p1 = pnand %p143_p0, %p137_p11 }
  0x21   :  { %147 = shalt.err (!%p144_p1)
}
  0x22   :  { %33 = dma.hbm_to_vmem [thread:$0]  %s320_s1, 256, %s31_s18, [#allocation6]  }
  0x23   :  { %214 = dma.done.wait [#allocation3], 256  }
  0x24   :  { %215 = vsyncadd [#allocation3], 4294967040 }
  0x25   :  { %216 = dma.done.wait [#allocation6], 256  }
  0x26   :  { %217 = vsyncadd [#allocation6], 4294967040  ;;  %s224_s12 = smov [#allocation7]   ;;  %v40_v0 = vld [vmem:[#allocation2] sm:$0xff]  ;;  %v42_v1 = vld [vmem:[#allocation5] sm:$0xff]  ;;  %s225_s14 = smov [#allocation8]  }
  0x27   :  { %s62_s13 = sshll.u32 %s224_s12, 4  ;;  %v41_v2 = vld [vmem:[#allocation2 + $0x8] sm:$0xff]  ;;  %v44_v3 = vadd.f32 %v42_v1, %v40_v0  ;;  %v43_v4 = vld [vmem:[#allocation5 + $0x8] sm:$0xff]  ;;  %s72_s15 = sshll.u32 %s225_s14, 4  ;;  %s63_s13 = int_to_ptr.vmem [resolvable:$true] %s62_s13  ;;  %s276_s15 = int_to_ptr.vmem [resolvable:$true] %s72_s15 }
  0x28   :  { %v45_v5 = vadd.f32 %v43_v4, %v41_v2  ;;  %s226_s16 = smov [#allocation10]   ;;  %s148_s1 = scalar_lea.vmem %s63_s13, 256 }
  0x29   :  { %v46_v6 = vadd.f32 3.0, %v44_v3  ;;  %50 = vst [vmem:[#allocation7] sm:$0xff] %v44_v3  ;;  %s82_s17 = sshll.u32 %s226_s16, 4  ;;  %p149_p2 = scmp.ne.s32.totalorder %s63_s13, %s148_s1  ;;  %s83_s17 = int_to_ptr.vmem [resolvable:$true] %s82_s17 }
  0x2a   :  { %v47_v7 = vadd.f32 3.0, %v45_v5  ;;  %51 = vst [vmem:[#allocation7 + $0x8] sm:$0xff] %v45_v5  ;;  %p153_p3 = scmp.lt.s32.totalorder %s63_s13, %s63_s13  ;;  %p154_p4 = scmp.lt.s32.totalorder %s148_s1, %s148_s1 }
  0x2b   :  { %52 = vst [vmem:[#allocation8] sm:$0xff] %v46_v6  ;;  %v48_v8 = vmul.f32 2.0, %v46_v6 }
  0x2c   :  { %p155_p5 = por %p154_p4, %p153_p3 }
  0x2e   :  { %p156_p6 = pnand %p155_p5, %p149_p2 }
  0x30   :  { %159 = shalt.err (!%p156_p6)
}
  0x31   :  { %s160_s20 = scalar_lea.hbm %s321_s2, 256 }
  0x32   :  { %p161_p7 = scmp.ne.s32.totalorder %s321_s2, %s160_s20  ;;  %p164_p8 = scmp.lt.u32.totalorder %s160_s20, %s321_s2 }
  0x34   :  { %p166_p9 = pnand %p164_p8, %p161_p7 }
  0x36   :  { %169 = shalt.err (!%p166_p9)
}
  0x37   :  { %65 = dma.vmem_to_hbm [thread:$0]  %s63_s13, 256, %s321_s2, [#allocation4]   ;;  %53 = vst [vmem:[#allocation8 + $0x8] sm:$0xff] %v47_v7  ;;  %v49_v9 = vmul.f32 2.0, %v47_v7  ;;  %54 = vst [vmem:[#allocation10] sm:$0xff] %v48_v8 }
  0x38   :  { %s170_s27 = scalar_lea.vmem %s276_s15, 256  ;;  %p175_p11 = scmp.lt.s32.totalorder %s276_s15, %s276_s15 }
  0x39   :  { %p171_p10 = scmp.ne.s32.totalorder %s276_s15, %s170_s27  ;;  %p176_p12 = scmp.lt.s32.totalorder %s170_s27, %s170_s27 }
  0x3b   :  { %p177_p13 = por %p176_p12, %p175_p11 }
  0x3d   :  { %p178_p0 = pnand %p177_p13, %p171_p10 }
  0x3f   :  { %181 = shalt.err (!%p178_p0)
}
  0x40   :  { %s182_s30 = scalar_lea.hbm %s322_s3, 256 }
  0x41   :  { %p183_p1 = scmp.ne.s32.totalorder %s322_s3, %s182_s30  ;;  %p186_p2 = scmp.lt.u32.totalorder %s182_s30, %s322_s3 }
  0x43   :  { %p188_p3 = pnand %p186_p2, %p183_p1 }
  0x45   :  { %191 = shalt.err (!%p188_p3)
}
  0x46   :  { %75 = dma.vmem_to_hbm [thread:$0]  %s276_s15, 256, %s322_s3, [#allocation9]   ;;  %55 = vst [vmem:[#allocation10 + $0x8] sm:$0xff] %v49_v9 }
  0x47   :  { %s192_s10 = scalar_lea.vmem %s83_s17, 256  ;;  %p197_p5 = scmp.lt.s32.totalorder %s83_s17, %s83_s17 }
  0x48   :  { %p193_p4 = scmp.ne.s32.totalorder %s83_s17, %s192_s10  ;;  %p198_p6 = scmp.lt.s32.totalorder %s192_s10, %s192_s10 }
  0x4a   :  { %p199_p7 = por %p198_p6, %p197_p5 }
  0x4c   :  { %p200_p8 = pnand %p199_p7, %p193_p4 }
  0x4e   :  { %203 = shalt.err (!%p200_p8)
}
  0x4f   :  { %s204_s12 = scalar_lea.hbm %s323_s4, 256 }
  0x50   :  { %p205_p9 = scmp.ne.s32.totalorder %s323_s4, %s204_s12  ;;  %p208_p10 = scmp.lt.u32.totalorder %s204_s12, %s323_s4 }
  0x52   :  { %p210_p11 = pnand %p208_p10, %p205_p9 }
  0x54   :  { %213 = shalt.err (!%p210_p11)
}
  0x55   :  { %85 = dma.vmem_to_hbm [thread:$0]  %s83_s17, 256, %s323_s4, [#allocation9]  }
  0x56   :  { %218 = dma.done.wait [#allocation4], 256  }
  0x57   :  { %219 = vsyncadd [#allocation4], 4294967040 }
  0x58   :  { %220 = dma.done.wait [#allocation9], 512  }
  0x59   :  { %221 = vsyncadd [#allocation9], 4294966784 }
  0x5a   :  { %95 = vsyncpa [#allocation3], 1 }
  0x5b   :  { %96 = vsyncpa [#allocation6], 1 }
  0x5c   :  { %97 = vsyncpa [#allocation4], 1 }
  0x5d   :  { %98 = vsyncpa [#allocation9], 1 }

</bundles_post_ra>
